<compile_context>
chip_gen: v7x
topology: tpu7x:2x2x1
jax: 0.10.0
libtpu: 0.0.40
codegen_flags: <defaults>
</compile_context>

<pallas_src>
import functools

import jax
import jax.numpy as jnp
from jax import lax
from jax.experimental import pallas as pl
from jax.experimental.pallas import tpu as pltpu


def _supcon_tile_kernel(feat_all_ref, lbl_col_ref, lbl_row_ref,
                        loss_ref, single_ref, *, inv_temp, tile_m):
    i = pl.program_id(0)

    fa = feat_all_ref[...]                               # (B, D), resident, orig dtype
    # Anchor rows are a slice of the resident feature block: no second DMA stream.
    row0 = pl.multiple_of(i * tile_m, 8)
    fb = feat_all_ref[pl.ds(row0, tile_m), :]            # (TM, D)

    # Fold 1/temperature into the (small) anchor operand and contract on the
    # feature dim of both operands (same QK^T pattern as flash attention; no
    # materialized transpose of the resident (B, D) block).
    adc = lax.dot_general(
        fb * inv_temp, fa,
        dimension_numbers=(((1,), (1,)), ((), ())),
        preferred_element_type=jnp.float32)              # (TM, B) f32

    tm, b = adc.shape

    lc = lbl_col_ref[...]                                # (TM, 1) int32
    lr = lbl_row_ref[...]                                # (1,  B) int32

    # Narrow iotas; only the combined boolean masks live at (TM, B).
    row_ids = lax.broadcasted_iota(jnp.int32, (tm, 1), 0) + i * tile_m
    col_ids = lax.broadcasted_iota(jnp.int32, (1, b), 1)
    not_self = row_ids != col_ids                        # (TM, B) bool
    pos_mask = (lc == lr) & not_self                     # (TM, B) bool

    # Numerically stable logits (row max includes the diagonal, like the ref).
    logits = adc - jnp.max(adc, axis=1, keepdims=True)   # (TM, B)

    mask_sum = jnp.sum(jnp.where(pos_mask, 1.0, 0.0),
                       axis=1, keepdims=True)            # (TM, 1)
    single = (mask_sum == 0.0).astype(jnp.float32)       # (TM, 1)

    denom_sum = jnp.sum(jnp.where(not_self, jnp.exp(logits), 0.0),
                        axis=1, keepdims=True)           # (TM, 1)
    log_denom = jnp.log(denom_sum)                       # (TM, 1)

    # Fused reduction: sum(mask*(logits - log_denom))
    #                = sum(mask*logits) - mask_sum*log_denom
    # so the (TM, B) log_prob matrix is never materialized.
    masked_logit_sum = jnp.sum(jnp.where(pos_mask, logits, 0.0),
                               axis=1, keepdims=True)    # (TM, 1)
    mean_log_prob_pos = (masked_logit_sum - mask_sum * log_denom) / (
        mask_sum + single)

    loss_ref[...] = -mean_log_prob_pos * (1.0 - single)  # (TM, 1)
    single_ref[...] = single                             # (TM, 1)


def _vmem_capacity_bytes():
    try:
        return int(pltpu.get_tpu_info().vmem_capacity_bytes)
    except Exception:
        return 64 * 1024 * 1024        # conservative (v7x per-TensorCore VMEM)


def _pick_tile_m(batch_size, feat_dim, feat_bytes, budget_bytes):
    """Largest 8-aligned row tile dividing B whose live VMEM fits the budget.

    Accounts for the single-buffered resident (B, D) features + (1, B) labels
    row, the sliced anchor block, double-buffered small per-tile blocks, and
    ~6 live (TM, B) f32 epilogue temporaries.
    """
    resident = batch_size * feat_dim * feat_bytes + batch_size * 4

    def tile_bytes(tm):
        temps = 6 * tm * batch_size * 4          # (TM, B) f32 epilogue temporaries
        anchor = tm * feat_dim * feat_bytes      # sliced anchor block
        small = 2 * 3 * (tm * 4)                 # labels_col + 2 outputs, double-buffered
        return temps + anchor + small

    cands = [t for t in range(8 * (batch_size // 8), 7, -8)
             if batch_size % t == 0]
    if not cands:
        # TODO(synk): batch sizes with no 8-aligned divisor fall back to one
        # monolithic tile; pad B to a multiple of 8 upstream if this matters.
        return batch_size

    # Prefer >= 2 grid steps so the "parallel" axis shards across both
    # TensorCores on v7x (harmless elsewhere: one extra ~0.35 us grid step).
    multi = [t for t in cands if 2 * t <= batch_size]
    if multi:
        cands = multi

    for t in cands:                              # largest first
        if resident + tile_bytes(t) <= budget_bytes:
            return t
    return cands[-1]                             # best effort: smallest aligned divisor


def supcon_loss_clear(features, labels, temperature=0.07, tile_m=None):
    """Pallas implementation of SupConLoss_clear.forward (returns a scalar)."""
    B, D = features.shape
    labels = labels.reshape(-1)
    labels_col = labels.reshape(B, 1).astype(jnp.int32)
    labels_row = labels.reshape(1, B).astype(jnp.int32)

    feat_bytes = jnp.dtype(features.dtype).itemsize
    vmem_budget = int(0.70 * _vmem_capacity_bytes())     # leave compiler headroom

    if tile_m is None:
        tile_m = _pick_tile_m(B, D, feat_bytes, vmem_budget)
    assert B % tile_m == 0, (B, tile_m)
    n_tiles = B // tile_m

    kernel = functools.partial(
        _supcon_tile_kernel,
        inv_temp=1.0 / float(temperature),
        tile_m=tile_m,
    )

    # Grid-invariant operands (constant index_map): single-buffered.
    feat_spec = pl.BlockSpec((B, D), lambda i: (0, 0),
                             pipeline_mode=pl.Buffered(1))
    lrow_spec = pl.BlockSpec((1, B), lambda i: (0, 0),
                             pipeline_mode=pl.Buffered(1))

    cost = pl.CostEstimate(
        flops=2 * B * B * D + 8 * B * B,                 # matmul + (B,B) epilogue
        transcendentals=B * B + B,                       # exp + log
        bytes_accessed=B * D * feat_bytes + 2 * B * 4 + 2 * B * 4,
    )

    loss_rows, single_rows = pl.pallas_call(
        kernel,
        grid=(n_tiles,),
        in_specs=[
            feat_spec,                                    # full features (anchors sliced in-kernel)
            pl.BlockSpec((tile_m, 1), lambda i: (i, 0)),  # labels column block
            lrow_spec,                                    # labels row (resident)
        ],
        out_specs=[
            pl.BlockSpec((tile_m, 1), lambda i: (i, 0)),  # per-row loss
            pl.BlockSpec((tile_m, 1), lambda i: (i, 0)),  # per-row singleton flag
        ],
        out_shape=[
            jax.ShapeDtypeStruct((B, 1), jnp.float32),
            jax.ShapeDtypeStruct((B, 1), jnp.float32),
        ],
        compiler_params=pltpu.CompilerParams(
            dimension_semantics=("parallel",),
            vmem_limit_bytes=vmem_budget,
        ),
        cost_estimate=cost,
    )(features, labels_col, labels_row)

    # Tiny final scalar reduction in plain JAX (keeps the grid axis fully parallel).
    n_single = jnp.sum(single_rows)
    denom = jnp.float32(B) - n_single    # matches PyTorch: NaN if every row is a singleton
    return jnp.sum(loss_rows) / denom


def _reference_loss(features, labels, temperature=0.07):
    """Pure-JAX reference mirroring the PyTorch module (for sanity check)."""
    features = features.astype(jnp.float32)
    B = features.shape[0]
    labels = labels.reshape(-1, 1)
    mask = (labels == labels.T).astype(jnp.float32)
    adc = (features @ features.T) / temperature
    logits = adc - jnp.max(adc, axis=1, keepdims=True)
    logits_mask = 1.0 - jnp.eye(B, dtype=jnp.float32)
    mask = mask * logits_mask
    single = (mask.sum(1) == 0).astype(jnp.float32)
    exp_logits = jnp.exp(logits) * logits_mask
    log_prob = logits - jnp.log(exp_logits.sum(1, keepdims=True))
    mean_log_prob_pos = (mask * log_prob).sum(1) / (mask.sum(1) + single)
    loss = -mean_log_prob_pos * (1.0 - single)
    return loss.sum() / (B - single.sum())


if __name__ == "__main__":
    key = jax.random.PRNGKey(0)
    kf, kf2 = jax.random.split(key)

    # Small shapes consistent with the module: batch=8, feature dim=32.
    B, D = 8, 32
    features = jax.random.normal(kf, (B, D), dtype=jnp.float32)
    features = features / jnp.linalg.norm(features, axis=1, keepdims=True)
    labels = jnp.array([0, 0, 1, 1, 2, 2, 3, 3], dtype=jnp.int32)

    loss = jax.block_until_ready(supcon_loss_clear(features, labels, temperature=0.07))
    ref = _reference_loss(features, labels, temperature=0.07)
    assert jnp.allclose(loss, ref, rtol=1e-4, atol=1e-5), (loss, ref)

    # Also exercise the multi-tile (grid > 1, parallel) path.
    B2, D2 = 16, 32
    feats2 = jax.random.normal(kf2, (B2, D2), dtype=jnp.float32)
    feats2 = feats2 / jnp.linalg.norm(feats2, axis=1, keepdims=True)
    labels2 = (jnp.arange(B2, dtype=jnp.int32) % 4)
    loss2 = jax.block_until_ready(
        supcon_loss_clear(feats2, labels2, temperature=0.07, tile_m=8))
    ref2 = _reference_loss(feats2, labels2, temperature=0.07)
    assert jnp.allclose(loss2, ref2, rtol=1e-4, atol=1e-5), (loss2, ref2)

    print("KERNEL_OK")
</pallas_src>

<mosaic_0001>
module attributes {stable_mosaic.version = 11 : i64} {
  func.func @_supcon_tile_kernel(%arg0: i32, %arg1: memref<8x32xf32, #tpu.memory_space<vmem>>, %arg2: memref<8x1xi32, #tpu.memory_space<vmem>>, %arg3: memref<1x8xi32, #tpu.memory_space<vmem>>, %arg4: memref<8x1xf32, #tpu.memory_space<vmem>>, %arg5: memref<8x1xf32, #tpu.memory_space<vmem>>) attributes {dimension_semantics = [#tpu.dimension_semantics<parallel>], iteration_bounds = array<i64: 1>, scalar_prefetch = 0 : i64, scratch_operands = 0 : i64, tpu.core_type = #tpu.core_type<tc>, window_params = [{pipeline_mode = #tpu.pipeline_mode<synchronous>, transform_indices = @transform_0, window_bounds = array<i64: 8, 32>}, {transform_indices = @transform_1, window_bounds = array<i64: 8, 1>}, {pipeline_mode = #tpu.pipeline_mode<synchronous>, transform_indices = @transform_2, window_bounds = array<i64: 1, 8>}, {transform_indices = @transform_3, window_bounds = array<i64: 8, 1>}, {transform_indices = @transform_4, window_bounds = array<i64: 8, 1>}]} {
    %c0 = arith.constant 0 : index
    %c0_0 = arith.constant 0 : index
    %0 = vector.load %arg1[%c0, %c0_0] : memref<8x32xf32, #tpu.memory_space<vmem>>, vector<8x32xf32>
    %c8_i32 = arith.constant 8 : i32
    %1 = arith.muli %arg0, %c8_i32 : i32
    %2 = tpu.assume_multiple %1, 8 : i32
    %3 = arith.index_cast %2 : i32 to index
    %c0_1 = arith.constant 0 : index
    %4 = vector.load %arg1[%3, %c0_1] : memref<8x32xf32, #tpu.memory_space<vmem>>, vector<8x32xf32>
    %cst = arith.constant 14.2857141 : f32
    %5 = vector.broadcast %cst : f32 to vector<8x32xf32>
    %6 = arith.mulf %4, %5 : vector<8x32xf32>
    %cst_2 = arith.constant dense<0.000000e+00> : vector<8x8xf32>
    %7 = tpu.matmul %6, %0, %cst_2 {dimension_numbers = #tpu.dot_dimension_numbers<[1], [1], [0], [0], [0, 0, 1, 0], [], []>} : vector<8x32xf32>, vector<8x32xf32>, vector<8x8xf32> -> vector<8x8xf32>
    %c0_3 = arith.constant 0 : index
    %c0_4 = arith.constant 0 : index
    %8 = vector.load %arg2[%c0_3, %c0_4] : memref<8x1xi32, #tpu.memory_space<vmem>>, vector<8x1xi32>
    %c0_5 = arith.constant 0 : index
    %c0_6 = arith.constant 0 : index
    %9 = vector.load %arg3[%c0_5, %c0_6] : memref<1x8xi32, #tpu.memory_space<vmem>>, vector<1x8xi32>
    %10 = tpu.iota {dimensions = array<i32: 0>} : vector<8x1xi32>
    %c8_i32_7 = arith.constant 8 : i32
    %11 = arith.muli %arg0, %c8_i32_7 : i32
    %12 = vector.broadcast %11 : i32 to vector<8x1xi32>
    %13 = arith.addi %10, %12 : vector<8x1xi32>
    %14 = tpu.iota {dimensions = array<i32: 1>} : vector<1x8xi32>
    %15 = vector.broadcast %13 : vector<8x1xi32> to vector<8x8xi32>
    %16 = vector.broadcast %14 : vector<1x8xi32> to vector<8x8xi32>
    %17 = arith.cmpi ne, %15, %16 : vector<8x8xi32>
    %18 = vector.broadcast %8 : vector<8x1xi32> to vector<8x8xi32>
    %19 = vector.broadcast %9 : vector<1x8xi32> to vector<8x8xi32>
    %20 = arith.cmpi eq, %18, %19 : vector<8x8xi32>
    %21 = arith.andi %20, %17 : vector<8x8xi1>
    %cst_8 = arith.constant dense<0xFF800000> : vector<8xf32>
    %22 = vector.multi_reduction <maximumf>, %7, %cst_8 [1] : vector<8x8xf32> to vector<8xf32>
    %23 = vector.shape_cast %22 : vector<8xf32> to vector<8x1xf32>
    %24 = vector.broadcast %23 : vector<8x1xf32> to vector<8x8xf32>
    %25 = arith.subf %7, %24 : vector<8x8xf32>
    %cst_9 = arith.constant 1.000000e+00 : f32
    %cst_10 = arith.constant 0.000000e+00 : f32
    %26 = vector.broadcast %cst_9 : f32 to vector<8x8xf32>
    %27 = vector.broadcast %cst_10 : f32 to vector<8x8xf32>
    %28 = arith.select %21, %26, %27 : vector<8x8xi1>, vector<8x8xf32>
    %cst_11 = arith.constant dense<0.000000e+00> : vector<8xf32>
    %29 = vector.multi_reduction <add>, %28, %cst_11 [1] : vector<8x8xf32> to vector<8xf32>
    %30 = vector.shape_cast %29 : vector<8xf32> to vector<8x1xf32>
    %cst_12 = arith.constant 0.000000e+00 : f32
    %31 = vector.broadcast %cst_12 : f32 to vector<8x1xf32>
    %32 = arith.cmpf oeq, %30, %31 : vector<8x1xf32>
    %33 = arith.extui %32 : vector<8x1xi1> to vector<8x1xi32>
    %34 = arith.sitofp %33 : vector<8x1xi32> to vector<8x1xf32>
    %35 = math.exp %25 : vector<8x8xf32>
    %cst_13 = arith.constant 0.000000e+00 : f32
    %36 = vector.broadcast %cst_13 : f32 to vector<8x8xf32>
    %37 = arith.select %17, %35, %36 : vector<8x8xi1>, vector<8x8xf32>
    %cst_14 = arith.constant dense<0.000000e+00> : vector<8xf32>
    %38 = vector.multi_reduction <add>, %37, %cst_14 [1] : vector<8x8xf32> to vector<8xf32>
    %39 = vector.shape_cast %38 : vector<8xf32> to vector<8x1xf32>
    %40 = math.log %39 : vector<8x1xf32>
    %cst_15 = arith.constant 0.000000e+00 : f32
    %41 = vector.broadcast %cst_15 : f32 to vector<8x8xf32>
    %42 = arith.select %21, %25, %41 : vector<8x8xi1>, vector<8x8xf32>
    %cst_16 = arith.constant dense<0.000000e+00> : vector<8xf32>
    %43 = vector.multi_reduction <add>, %42, %cst_16 [1] : vector<8x8xf32> to vector<8xf32>
    %44 = vector.shape_cast %43 : vector<8xf32> to vector<8x1xf32>
    %45 = arith.mulf %30, %40 : vector<8x1xf32>
    %46 = arith.subf %44, %45 : vector<8x1xf32>
    %47 = arith.addf %30, %34 : vector<8x1xf32>
    %48 = arith.divf %46, %47 : vector<8x1xf32>
    %cst_17 = arith.constant 0.000000e+00 : f32
    %49 = vector.broadcast %cst_17 : f32 to vector<8x1xf32>
    %50 = arith.subf %49, %48 : vector<8x1xf32>
    %cst_18 = arith.constant 1.000000e+00 : f32
    %51 = vector.broadcast %cst_18 : f32 to vector<8x1xf32>
    %52 = arith.subf %51, %34 : vector<8x1xf32>
    %53 = arith.mulf %50, %52 : vector<8x1xf32>
    %c0_19 = arith.constant 0 : index
    %c0_20 = arith.constant 0 : index
    %54 = vector.load %arg4[%c0_19, %c0_20] : memref<8x1xf32, #tpu.memory_space<vmem>>, vector<8x1xf32>
    tpu.vector_store %arg4[%c0_19, %c0_20], %53 {strides = array<i32>} : memref<8x1xf32, #tpu.memory_space<vmem>>, vector<8x1xf32>,
    %c0_21 = arith.constant 0 : index
    %c0_22 = arith.constant 0 : index
    %55 = vector.load %arg5[%c0_21, %c0_22] : memref<8x1xf32, #tpu.memory_space<vmem>>, vector<8x1xf32>
    tpu.vector_store %arg5[%c0_21, %c0_22], %34 {strides = array<i32>} : memref<8x1xf32, #tpu.memory_space<vmem>>, vector<8x1xf32>,
    return
  }
  func.func @transform_0(%arg0: i32) -> (i32, i32) {
    %c0_i32 = arith.constant 0 : i32
    %c0_i32_0 = arith.constant 0 : i32
    %c0_i32_1 = arith.constant 0 : i32
    return %c0_i32, %c0_i32_0 : i32, i32
  }
  func.func @transform_1(%arg0: i32) -> (i32, i32) {
    %c0_i32 = arith.constant 0 : i32
    %c0_i32_0 = arith.constant 0 : i32
    return %arg0, %c0_i32 : i32, i32
  }
  func.func @transform_2(%arg0: i32) -> (i32, i32) {
    %c0_i32 = arith.constant 0 : i32
    %c0_i32_0 = arith.constant 0 : i32
    %c0_i32_1 = arith.constant 0 : i32
    return %c0_i32, %c0_i32_0 : i32, i32
  }
  func.func @transform_3(%arg0: i32) -> (i32, i32) {
    %c0_i32 = arith.constant 0 : i32
    %c0_i32_0 = arith.constant 0 : i32
    return %arg0, %c0_i32 : i32, i32
  }
  func.func @transform_4(%arg0: i32) -> (i32, i32) {
    %c0_i32 = arith.constant 0 : i32
    %c0_i32_0 = arith.constant 0 : i32
    return %arg0, %c0_i32 : i32, i32
  }
}

</mosaic_0001>

<bundles_post_ra>
// kernel: tpu_custom_call.1
= control target key start
LH: loop header
LB: loop body
LE: loop exit
PB: predicated region body
PF: predicated region fallthrough
CT: control target
= control target key end

     0   :  { %vm21_vm0 = vcmask 261120   ;;  %v180_v0 = vmov 0.0   ;;  %vm181_vm1 = vmmov 0   ;;  %v182_v3 = vmov 0   ;;  %s229_s0 = inlined_call_operand.vmem [shape: f32[8,32], index: 0, kind: input, shape index: {}]   ;;  %s230_s1 = inlined_call_operand.vmem [shape: s32[8,1], index: 1, kind: input, shape index: {}]   ;;  %s231_s2 = inlined_call_operand.vmem [shape: s32[1,8], index: 2, kind: input, shape index: {}]   ;;  %s232_s4 = inlined_call_operand.vmem [shape: f32[8,1], index: 4, kind: output, shape index: {1}]   ;;  %s233_s3 = inlined_call_operand.vmem [shape: f32[8,1], index: 3, kind: output, shape index: {0}]  }
   0x1   :  { %165 = vmatprep.subr.mxu0 %v180_v0  ;;  %v16_v1 = vld [vmem:[%s229_s0] sm:$0xff]  ;;  %167 = vmatprep.mubr.msk.f32.mxu0 %vm181_vm1, %v180_v0  ;;  %vm116_vm2 = vcmask 64512   ;;  %v100_v11 = vlaneseq  ;;  %vm148_vm6 = vcmask 7168  }
   0x2   :  { %v20_v2 = vmul.f32 14.285714, %v16_v1  ;;  %166 = vmatpush3.xpose.msk.msra.mxu0 %vm21_vm0, %v16_v1  ;;  %173 = vset.pattern.permute.xlu0 %v182_v3  ;;  %v98_v7 = vld [vmem:[%s230_s1] sm:$0xff] }
   0x3   :  { %v101_v12 = vshrl.u32 %v100_v11, 7  ;;  %v105_v13 = vand.u32 127, %v100_v11  ;;  %v161_v14 = vld [vmem:[%s231_s2] ss:$0 sm:$0xff] }
   0x5   :  { %168 = vmatmul.mubr.msk.f32.vlgmr.msra.gmra.mrb[0].mxu0 %vm21_vm0, %v20_v2  ;;  %vm106_vm3 = vcmp.ne.s32.totalorder %v101_v12, %v105_v13 }
  0xd8   :  { %v94_v4 = vpop.f32.mrb[0].mxu0 }
  0xd9   :  { %v169_v5 = vpop.f32.mrb[1].mxu0  ;;  %v117_v6 = vsel %vm116_vm2, %v94_v4, -inf }
  0xda   :  { %118 = vmax.xlane.f32.xlu0 %v117_v6 }
  0xf0   :  { %108 = vperm.xlu0 %173, %v98_v7  }
 0x167   :  { %v119_v8 = vpop.xlane.xlu0 %118 }
 0x168   :  { %v120_v9 = vsub.f32 %v94_v4, %v119_v8 }
 0x16a   :  { %v128_v10 = vmul.f32 1.442695, %v120_v9 }
 0x16c   :  { %174 = vpow2.f32 %v128_v10 }
 0x16f   :  { %v109_v15 = vpop.permute.xlu0 %108 }
 0x170   :  { %vm114_vm4 = vcmp.eq.s32.totalorder %v109_v15, %v161_v14 }
 0x171   :  { %vm115_vm5 = vmand %vm114_vm4, %vm106_vm3 }
 0x172   :  { %v121_v18 = vsel %vm115_vm5, 1.0, %v180_v0  ;;  %v136_v21 = vsel %vm115_vm5, %v120_v9, 0.0 }
 0x173   :  { %v122_v20 = vsel %vm116_vm2, %v121_v18, 0.0  ;;  %v137_v22 = vsel %vm116_vm2, %v136_v21, 0.0 }
 0x176   :  { %v175_v16 = vpop.eup %174 }
 0x177   :  { %v130_v17 = vsel %vm106_vm3, %v175_v16, 0.0 }
 0x178   :  { %v131_v19 = vsel %vm116_vm2, %v130_v17, 0.0 }
 0x179   :  { %132 = vadd.xlane.f32.xlu1 %v131_v19 }
 0x17d   :  { %123 = vadd.xlane.f32.xlu1 %v122_v20 }
 0x181   :  { %138 = vadd.xlane.f32.xlu1 %v137_v22 }
 0x206   :  { %v133_v23 = vpop.xlane.xlu1 %132 }
 0x207   :  { %176 = vlog2.f32 %v133_v23 }
 0x20a   :  { %v124_v24 = vpop.xlane.xlu1 %123 }
 0x20b   :  { %vm125_vm7 = vcmp.eq.f32.partialorder %v124_v24, 0.0 }
 0x20c   :  { %v162_v25 = vsel %vm125_vm7, 1.0, %v180_v0 }
 0x20d   :  { %v142_v26 = vadd.f32 %v162_v25, %v124_v24  ;;  %150 = vst.msk [vmem:[%s232_s4] sm:$0xff] %vm148_vm6, %v162_v25  ;;  %v146_v34 = vsub.f32 1.0, %v162_v25 }
 0x20e   :  { %v139_v30 = vpop.xlane.xlu1 %138 }
 0x20f   :  { %178 = vrcp.f32 %v142_v26 }
 0x211   :  { %v177_v27 = vpop.eup %176 }
 0x212   :  { %v135_v28 = vmul.f32 0.6931472, %v177_v27 }
 0x214   :  { %v140_v29 = vmul.f32 %v135_v28, %v124_v24 }
 0x216   :  { %v141_v31 = vsub.f32 %v139_v30, %v140_v29 }
 0x219   :  { %v179_v32 = vpop.eup %178 }
 0x21a   :  { %v144_v33 = vmul.f32 %v179_v32, %v141_v31 }
 0x21c   :  { %v145_v35 = vsub.f32 0.0, %v144_v33 }
 0x21e   :  { %v147_v36 = vmul.f32 %v146_v34, %v145_v35 }
 0x220   :  { %149 = vst.msk [vmem:[%s233_s3] sm:$0xff] %vm148_vm6, %v147_v36 }

</bundles_post_ra>
